<compile_context>
chip_gen: v7x
topology: tpu7x:2x2x1
jax: 0.10.0
libtpu: 0.0.40
codegen_flags: <defaults>
</compile_context>

<pallas_src>
import functools

import jax
import jax.numpy as jnp
from jax.experimental import pallas as pl
from jax.experimental.pallas import tpu as pltpu


def _decomp_kernel(x_ref, res_ref, trend_ref, pbuf_ref, *, kernel_size, pad, seq_len):
    """Per-(batch, channel-tile) series decomposition.

    x_ref    : (1, L, Ct)            input tile
    res_ref  : (1, L, Ct)            output residual  (x - trend)
    trend_ref: (1, L, Ct)            output trend     (moving average)
    pbuf_ref : (1, L + 2*pad, Ct)    f32 VMEM scratch holding the
                                     replicate-padded sequence
    """
    ct = x_ref.shape[-1]
    xf = x_ref[...].astype(jnp.float32)  # (1, L, Ct), accumulate in f32

    # Build the replicate-padded sequence directly in VMEM (no HBM copy).
    pbuf_ref[:, pad:pad + seq_len, :] = xf
    if pad > 0:
        pbuf_ref[:, 0:pad, :] = jnp.broadcast_to(xf[:, 0:1, :], (1, pad, ct))
        pbuf_ref[:, pad + seq_len:pad + seq_len + pad, :] = jnp.broadcast_to(
            xf[:, seq_len - 1:seq_len, :], (1, pad, ct)
        )

    # k-tap sliding-window sum via statically shifted slices of the padded
    # buffer, reduced pairwise (tree) to shorten the add/reload chain.
    taps = [pbuf_ref[:, j:j + seq_len, :] for j in range(kernel_size)]
    while len(taps) > 1:
        nxt = [taps[i] + taps[i + 1] for i in range(0, len(taps) - 1, 2)]
        if len(taps) % 2 == 1:
            nxt.append(taps[-1])
        taps = nxt

    trend = taps[0] * (1.0 / kernel_size)
    trend_ref[...] = trend.astype(trend_ref.dtype)
    res_ref[...] = (xf - trend).astype(res_ref.dtype)


def series_decomp(x, kernel_size, *, c_tile=None):
    """Series decomposition: returns (res, trend), both shaped like x = (B, L, C)."""
    assert kernel_size % 2 == 1, (
        "kernel_size must be odd (the PyTorch series_decomp module is only "
        "shape-consistent for odd kernel sizes)"
    )
    B, L, C = x.shape
    pad = (kernel_size - 1) // 2

    # Lane-aligned channel tiling: a multiple of 128 when C allows it,
    # otherwise the whole (unaligned) C axis in one block.
    if c_tile is None:
        c_tile = C if (C % 128 != 0) else min(C, 512)
    assert c_tile == C or c_tile % 128 == 0
    num_c = pl.cdiv(C, c_tile)

    kernel = functools.partial(
        _decomp_kernel, kernel_size=kernel_size, pad=pad, seq_len=L
    )

    itemsize = jnp.dtype(x.dtype).itemsize
    n_elem = B * L * C
    cost = pl.CostEstimate(
        flops=int((kernel_size + 1) * n_elem),
        transcendentals=0,
        bytes_accessed=int(3 * n_elem * itemsize),  # read x + write res + write trend
    )

    res, trend = pl.pallas_call(
        kernel,
        out_shape=(
            jax.ShapeDtypeStruct((B, L, C), x.dtype),
            jax.ShapeDtypeStruct((B, L, C), x.dtype),
        ),
        grid_spec=pltpu.PrefetchScalarGridSpec(
            num_scalar_prefetch=0,
            grid=(B, num_c),
            in_specs=[
                pl.BlockSpec((1, L, c_tile), lambda b, c: (b, 0, c)),
            ],
            out_specs=[
                pl.BlockSpec((1, L, c_tile), lambda b, c: (b, 0, c)),
                pl.BlockSpec((1, L, c_tile), lambda b, c: (b, 0, c)),
            ],
            scratch_shapes=[pltpu.VMEM((1, L + 2 * pad, c_tile), jnp.float32)],
        ),
        compiler_params=pltpu.CompilerParams(
            dimension_semantics=("parallel", "parallel"),
        ),
        cost_estimate=cost,
    )(x)
    return res, trend


def series_decomp_ref(x, kernel_size):
    """Pure-JAX reference mirroring the PyTorch module (odd kernel_size)."""
    pad = (kernel_size - 1) // 2
    front = jnp.repeat(x[:, 0:1, :], pad, axis=1)
    end = jnp.repeat(x[:, -1:, :], pad, axis=1)
    xpad = jnp.concatenate([front, x, end], axis=1)
    out_len = xpad.shape[1] - kernel_size + 1
    windows = jnp.stack(
        [xpad[:, j:j + out_len, :] for j in range(kernel_size)], axis=0
    )
    trend = jnp.mean(windows, axis=0)
    res = x[:, :out_len, :] - trend
    return res, trend


if __name__ == "__main__":
    # Case 1: small canonical config (B=2, L=8, C=4, kernel_size=5).
    key = jax.random.PRNGKey(0)
    B, L, C = 2, 8, 4
    kernel_size = 5
    x = jax.random.normal(key, (B, L, C), dtype=jnp.float32)

    res, trend = series_decomp(x, kernel_size)
    res = jax.block_until_ready(res)
    trend = jax.block_until_ready(trend)
    res_r, trend_r = series_decomp_ref(x, kernel_size)

    assert res.shape == (B, L, C) and trend.shape == (B, L, C)
    assert jnp.allclose(res, res_r, atol=1e-5, rtol=1e-5)
    assert jnp.allclose(trend, trend_r, atol=1e-5, rtol=1e-5)

    # Case 2: exercises channel tiling (grid=(1, 2)), B=1, larger kernel.
    B2, L2, C2, k2 = 1, 16, 256, 25
    x2 = jax.random.normal(jax.random.PRNGKey(0), (B2, L2, C2), dtype=jnp.float32)
    res2, trend2 = series_decomp(x2, k2, c_tile=128)
    res2 = jax.block_until_ready(res2)
    trend2 = jax.block_until_ready(trend2)
    res2_r, trend2_r = series_decomp_ref(x2, k2)

    assert jnp.allclose(res2, res2_r, atol=1e-5, rtol=1e-5)
    assert jnp.allclose(trend2, trend2_r, atol=1e-5, rtol=1e-5)

    print("KERNEL_OK")
</pallas_src>

<mosaic_0001>
module attributes {stable_mosaic.version = 11 : i64} {
  func.func @_decomp_kernel(%arg0: i32, %arg1: i32, %arg2: memref<1x8x4xf32, #tpu.memory_space<vmem>>, %arg3: memref<1x8x4xf32, #tpu.memory_space<vmem>>, %arg4: memref<1x8x4xf32, #tpu.memory_space<vmem>>, %arg5: memref<1x12x4xf32, #tpu.memory_space<vmem>>) attributes {dimension_semantics = [#tpu.dimension_semantics<parallel>, #tpu.dimension_semantics<parallel>], iteration_bounds = array<i64: 2, 1>, scalar_prefetch = 0 : i64, scratch_operands = 1 : i64, tpu.core_type = #tpu.core_type<tc>, window_params = [{transform_indices = @transform_0, window_bounds = array<i64: 1, 8, 4>}, {transform_indices = @transform_1, window_bounds = array<i64: 1, 8, 4>}, {transform_indices = @transform_2, window_bounds = array<i64: 1, 8, 4>}]} {
    %c0 = arith.constant 0 : index
    %c0_0 = arith.constant 0 : index
    %c0_1 = arith.constant 0 : index
    %0 = vector.load %arg2[%c0, %c0_0, %c0_1] : memref<1x8x4xf32, #tpu.memory_space<vmem>>, vector<1x8x4xf32>
    %c0_2 = arith.constant 0 : index
    %c2 = arith.constant 2 : index
    %c0_3 = arith.constant 0 : index
    %1 = vector.load %arg5[%c0_2, %c2, %c0_3] : memref<1x12x4xf32, #tpu.memory_space<vmem>>, vector<1x8x4xf32>
    tpu.vector_store %arg5[%c0_2, %c2, %c0_3], %0 {strides = array<i32>} : memref<1x12x4xf32, #tpu.memory_space<vmem>>, vector<1x8x4xf32>,
    %2 = vector.extract_strided_slice %0 {offsets = [0, 0, 0], sizes = [1, 1, 4], strides = [1, 1, 1]} : vector<1x8x4xf32> to vector<1x1x4xf32>
    %3 = vector.shape_cast %2 : vector<1x1x4xf32> to vector<1x1x4xf32>
    %4 = vector.broadcast %3 : vector<1x1x4xf32> to vector<1x2x4xf32>
    %c0_4 = arith.constant 0 : index
    %c0_5 = arith.constant 0 : index
    %c0_6 = arith.constant 0 : index
    %5 = vector.load %arg5[%c0_4, %c0_5, %c0_6] : memref<1x12x4xf32, #tpu.memory_space<vmem>>, vector<1x2x4xf32>
    tpu.vector_store %arg5[%c0_4, %c0_5, %c0_6], %4 {strides = array<i32>} : memref<1x12x4xf32, #tpu.memory_space<vmem>>, vector<1x2x4xf32>,
    %6 = vector.extract_strided_slice %0 {offsets = [0, 7, 0], sizes = [1, 1, 4], strides = [1, 1, 1]} : vector<1x8x4xf32> to vector<1x1x4xf32>
    %7 = vector.shape_cast %6 : vector<1x1x4xf32> to vector<1x1x4xf32>
    %8 = vector.broadcast %7 : vector<1x1x4xf32> to vector<1x2x4xf32>
    %c0_7 = arith.constant 0 : index
    %c10 = arith.constant 10 : index
    %c0_8 = arith.constant 0 : index
    %9 = vector.load %arg5[%c0_7, %c10, %c0_8] : memref<1x12x4xf32, #tpu.memory_space<vmem>>, vector<1x2x4xf32>
    tpu.vector_store %arg5[%c0_7, %c10, %c0_8], %8 {strides = array<i32>} : memref<1x12x4xf32, #tpu.memory_space<vmem>>, vector<1x2x4xf32>,
    %c0_9 = arith.constant 0 : index
    %c0_10 = arith.constant 0 : index
    %c0_11 = arith.constant 0 : index
    %10 = vector.load %arg5[%c0_9, %c0_10, %c0_11] : memref<1x12x4xf32, #tpu.memory_space<vmem>>, vector<1x8x4xf32>
    %c0_12 = arith.constant 0 : index
    %c1 = arith.constant 1 : index
    %c0_13 = arith.constant 0 : index
    %11 = vector.load %arg5[%c0_12, %c1, %c0_13] : memref<1x12x4xf32, #tpu.memory_space<vmem>>, vector<1x8x4xf32>
    %c0_14 = arith.constant 0 : index
    %c2_15 = arith.constant 2 : index
    %c0_16 = arith.constant 0 : index
    %12 = vector.load %arg5[%c0_14, %c2_15, %c0_16] : memref<1x12x4xf32, #tpu.memory_space<vmem>>, vector<1x8x4xf32>
    %c0_17 = arith.constant 0 : index
    %c3 = arith.constant 3 : index
    %c0_18 = arith.constant 0 : index
    %13 = vector.load %arg5[%c0_17, %c3, %c0_18] : memref<1x12x4xf32, #tpu.memory_space<vmem>>, vector<1x8x4xf32>
    %c0_19 = arith.constant 0 : index
    %c4 = arith.constant 4 : index
    %c0_20 = arith.constant 0 : index
    %14 = vector.load %arg5[%c0_19, %c4, %c0_20] : memref<1x12x4xf32, #tpu.memory_space<vmem>>, vector<1x8x4xf32>
    %15 = arith.addf %10, %11 : vector<1x8x4xf32>
    %16 = arith.addf %12, %13 : vector<1x8x4xf32>
    %17 = arith.addf %15, %16 : vector<1x8x4xf32>
    %18 = arith.addf %17, %14 : vector<1x8x4xf32>
    %cst = arith.constant 2.000000e-01 : f32
    %19 = vector.broadcast %cst : f32 to vector<1x8x4xf32>
    %20 = arith.mulf %18, %19 : vector<1x8x4xf32>
    %c0_21 = arith.constant 0 : index
    %c0_22 = arith.constant 0 : index
    %c0_23 = arith.constant 0 : index
    %21 = vector.load %arg4[%c0_21, %c0_22, %c0_23] : memref<1x8x4xf32, #tpu.memory_space<vmem>>, vector<1x8x4xf32>
    tpu.vector_store %arg4[%c0_21, %c0_22, %c0_23], %20 {strides = array<i32>} : memref<1x8x4xf32, #tpu.memory_space<vmem>>, vector<1x8x4xf32>,
    %22 = arith.subf %0, %20 : vector<1x8x4xf32>
    %c0_24 = arith.constant 0 : index
    %c0_25 = arith.constant 0 : index
    %c0_26 = arith.constant 0 : index
    %23 = vector.load %arg3[%c0_24, %c0_25, %c0_26] : memref<1x8x4xf32, #tpu.memory_space<vmem>>, vector<1x8x4xf32>
    tpu.vector_store %arg3[%c0_24, %c0_25, %c0_26], %22 {strides = array<i32>} : memref<1x8x4xf32, #tpu.memory_space<vmem>>, vector<1x8x4xf32>,
    return
  }
  func.func @transform_0(%arg0: i32, %arg1: i32) -> (i32, i32, i32) {
    %c0_i32 = arith.constant 0 : i32
    %c0_i32_0 = arith.constant 0 : i32
    return %arg0, %c0_i32, %arg1 : i32, i32, i32
  }
  func.func @transform_1(%arg0: i32, %arg1: i32) -> (i32, i32, i32) {
    %c0_i32 = arith.constant 0 : i32
    %c0_i32_0 = arith.constant 0 : i32
    return %arg0, %c0_i32, %arg1 : i32, i32, i32
  }
  func.func @transform_2(%arg0: i32, %arg1: i32) -> (i32, i32, i32) {
    %c0_i32 = arith.constant 0 : i32
    %c0_i32_0 = arith.constant 0 : i32
    return %arg0, %c0_i32, %arg1 : i32, i32, i32
  }
}

</mosaic_0001>

<bundles_post_ra>
// kernel: tpu_custom_call.1
= control target key start
LH: loop header
LB: loop body
LE: loop exit
PB: predicated region body
PF: predicated region fallthrough
CT: control target
= control target key end

     0   :  { %s404_s9 = smov 0   ;;  %s406_s10 = smov 0   ;;  %s443_s0 = inlined_call_operand.vmem [shape: f32[2,8,4], index: 0, kind: input, shape index: {}]   ;;  %s444_s1 = inlined_call_operand.vmem [shape: f32[2,8,4], index: 1, kind: output, shape index: {0}]   ;;  %s445_s2 = inlined_call_operand.vmem [shape: f32[2,8,4], index: 2, kind: output, shape index: {1}]  }
   0x1   :  { %s408_s11 = smov 0  }
   0x2 LB: > { %s25_s12 = sadd.s32 1, %s383_s10  ;;  %p335_p0 = scmp.ge.s32.totalorder %s387_s11, 1  ;;  %s387_s11 = sphi %s408_s11, %s13_s11   ;;  %s383_s10 = sphi %s406_s10, %s447_s10   ;;  %s379_s9 = sphi %s404_s9, %s446_s9  }
   0x3   : > { %p27_p1 = scmp.ge.s32.totalorder %s25_s12, 2  ;;  %p135_p2 = scmp.lt.s32.totalorder %s387_s11, 3 }
   0x5   : > { %s449_s12 = smov (%p27_p1, %s25_s12), 0  ;;  %p136_p3 = pnand %p335_p0, %p135_p2 }
   0x6   : > { %p168_p4 = scmp.lt.s32.totalorder (!%p136_p3), %s379_s9, 1  ;;  %v192_v0 = vlaneseq (!%p136_p3)  ;;  %vm190_vm0 = vcmask (!%p136_p3), 31744   ;;  %vm196_vm1 = vcmask (!%p136_p3), 25600  }
   0x7   : > { %139 = sbr.rel (%p136_p3) target bundleno = 41 (0x29), region = 24 }
   0x8   : > { %v193_v1 = vshrl.u32 (!%p136_p3), %v192_v0, 7 }
   0xa   : > { %v194_v2 = vsub.s32 (!%p136_p3), 0, %v193_v1  ;;  %v200_v3 = vsub.s32 (!%p136_p3), 7, %v193_v1 }
   0xe   : > { %s451_s9 = smov (!%p168_p4, %s379_s9), 1 }
   0xf   : > { %s336_s13 = sshll.u32 %s451_s9, 3 }
  0x10   : > { %s174_s16 = scalar_lea.vmem %s443_s0, %s336_s13  ;;  %s188_s19 = scalar_lea.vmem %s445_s2, %s336_s13 }
  0x11   : > { %v189_v4 = vld [vmem:[%s174_s16] sm:$0xff]  ;;  %s181_s22 = scalar_lea.vmem %s444_s1, %s336_s13 }
  0x12   : > { %191 = vst.msk [vmem:[#allocation2 + $0x2] sm:$0xff] %vm190_vm0, %v189_v4  ;;  %v195_v5 = vrot.slane %v189_v4, %v194_v2  ;;  %v201_v6 = vrot.slane %v189_v4, %v200_v3 }
  0x14   : > { %197 = vst.msk [vmem:[#allocation2] sm:$0x3] %vm196_vm1, %v195_v5  ;;  %202 = vst.msk [vmem:[#allocation2 + $0xa] sm:$0x3] %vm196_vm1, %v201_v6 }
  0x19   : > { %v205_v7 = vld [vmem:[#allocation2 + $0x2] sm:$0xff] }
  0x1b   : > { %v203_v8 = vld [vmem:[#allocation2] sm:$0xff] }
  0x1c   : > { %v204_v9 = vld [vmem:[#allocation2 + $0x1] sm:$0xff] }
  0x1d   : > { %v206_v10 = vld [vmem:[#allocation2 + $0x3] sm:$0xff]  ;;  %v208_v11 = vadd.f32 %v204_v9, %v203_v8 }
  0x1e   : > { %v209_v12 = vadd.f32 %v206_v10, %v205_v7  ;;  %v207_v14 = vld [vmem:[#allocation2 + $0x4] sm:$0xff] }
  0x20   : > { %v210_v13 = vadd.f32 %v209_v12, %v208_v11 }
  0x22   : > { %v211_v15 = vadd.f32 %v210_v13, %v207_v14 }
  0x24   : > { %v212_v16 = vmul.f32 0.2, %v211_v15 }
  0x26   : > { %213 = vst.msk [vmem:[%s188_s19] sm:$0xff] %vm190_vm0, %v212_v16  ;;  %v214_v17 = vsub.f32 %v189_v4, %v212_v16 }
  0x28   : > { %215 = vst.msk [vmem:[%s181_s22] sm:$0xff] %vm190_vm0, %v214_v17 }
  0x29 PF: > { %s13_s11 = sadd.s32 1, %s387_s11   ;;  %s446_s9 = smov %s383_s10 }
  0x2a   : > { %p10_p5 = scmp.ge.s32.totalorder %s13_s11, 4   ;;  %s447_s10 = smov %s449_s12 }
  0x2c   :  { %12 = sbr.rel (!%p10_p5) target bundleno = 2 (0x2), region = 66 }

</bundles_post_ra>
